<compile_context>
chip_gen: v5e
topology: v5e:2x2
jax: 0.10.0
libtpu: 0.0.40
codegen_flags: <defaults>
</compile_context>

<pallas_src>
import functools

import jax
import jax.numpy as jnp
from jax.experimental import pallas as pl
from jax.experimental.pallas import tpu as pltpu


def mlp_kernel(x_ref, w1_ref, b1_ref, w2_ref, b2_ref, w3_ref, b3_ref, o_ref):
    # In-kernel cast of x to the matmul dtype (no-op for the f32 path).
    x = x_ref[...].astype(w1_ref.dtype)
    # Linear 1 + ReLU  (MXU matmul, f32 accumulation; bias/ReLU in f32)
    h1 = jnp.dot(x, w1_ref[...], preferred_element_type=jnp.float32)
    h1 = jnp.maximum(h1 + b1_ref[...], 0.0)
    # Linear 2 + ReLU
    h2 = jnp.dot(h1.astype(w2_ref.dtype), w2_ref[...],
                 preferred_element_type=jnp.float32)
    h2 = jnp.maximum(h2 + b2_ref[...], 0.0)
    # Linear 3 (no activation) — lane-dense (out_pad = multiple of 128) store.
    out = jnp.dot(h2.astype(w3_ref.dtype), w3_ref[...],
                  preferred_element_type=jnp.float32)
    o_ref[...] = (out + b3_ref[...]).astype(o_ref.dtype)


def _round_up(x, m):
    return ((x + m - 1) // m) * m


def _vmem_budget_bytes():
    """Generation-aware VMEM budget (~45% of physical; fallback 64 MiB)."""
    cap = 64 << 20
    try:
        info = pltpu.get_tpu_info()
        cap = int(getattr(info, "vmem_capacity_bytes", cap))
    except Exception:
        pass
    return int(cap * 0.45)


def _pick_batch_tile(B, in_dim, hid_pad, out_pad, mm_bytes, sub, budget):
    """Largest batch tile (<= 8192 rows) fitting the VMEM budget w/ 20% headroom."""
    tile = max(sub, min(_round_up(B, sub), 8192))

    def footprint(t):
        x_io = 2 * t * in_dim * 4                    # f32 x input, double-buffered
        x_cast = t * in_dim * mm_bytes               # in-kernel cast copy of x
        wts = (in_dim * hid_pad + hid_pad * hid_pad
               + hid_pad * out_pad) * mm_bytes       # weights, SINGLE-buffered
        bias = (2 * hid_pad + out_pad) * 4
        acts = 2 * t * hid_pad * 4                   # f32 h1 / h2 matmul results
        acts_c = 2 * t * hid_pad * mm_bytes          # bf16 casts of h1 / h2
        out_io = 2 * t * out_pad * 4 + t * out_pad * 4   # out double-buffer + f32 result
        scratch = 1 << 20                            # Mosaic internal scratch
        return x_io + x_cast + wts + bias + acts + acts_c + out_io + scratch

    headroom_budget = int(budget * 0.8)              # keep ~20% headroom
    while tile > sub and footprint(tile) > headroom_budget:
        tile = max(sub, _round_up(tile // 2, sub))

    # When B is large, ensure >= 2 grid steps so the ("parallel",) batch axis
    # can shard across both v7x TensorCores (extra step overhead is negligible
    # at this size; harmless on single-TC chips).
    if B >= 2048:
        tile = min(tile, _round_up(-(-B // 2), sub))
    return tile


def _resident_spec(shape):
    """BlockSpec for a grid-invariant (weight/bias) block: single-buffered."""
    fixed = lambda i: (0, 0)
    try:
        return pl.BlockSpec(shape, fixed, pipeline_mode=pl.Buffered(1))
    except TypeError:  # older jax without pipeline_mode kwarg
        return pl.BlockSpec(shape, fixed)


@functools.partial(jax.jit, static_argnames=("batch_tile", "matmul_dtype"))
def mlp_forward(x, w1, b1, w2, b2, w3, b3, *, batch_tile=None,
                matmul_dtype=jnp.bfloat16):
    B, in_dim = x.shape
    hid = w1.shape[1]
    out_dim = w3.shape[1]
    out_dtype = x.dtype

    mm = jnp.dtype(matmul_dtype)
    mm_bytes = mm.itemsize
    sub = 8  # x / out are f32 at the HBM boundary -> 8-row sublane pack

    # Lane-dense feature dims: pad hidden & output widths to multiples of 128.
    hid_pad = _round_up(hid, 128)
    out_pad = _round_up(out_dim, 128)

    # Weights/biases are tiny -> pad + cast them in the wrapper; x stays f32
    # (cast happens in-kernel).
    def prep_w(w, rows, cols):
        return jnp.pad(w, ((0, rows - w.shape[0]), (0, cols - w.shape[1]))).astype(mm)

    def prep_b(b, cols):
        b2d = b.reshape(1, -1)
        return jnp.pad(b2d, ((0, 0), (0, cols - b2d.shape[1]))).astype(jnp.float32)

    w1p = prep_w(w1, in_dim, hid_pad)
    w2p = prep_w(w2, hid_pad, hid_pad)
    w3p = prep_w(w3, hid_pad, out_pad)
    b1p = prep_b(b1, hid_pad)
    b2p = prep_b(b2, hid_pad)
    b3p = prep_b(b3, out_pad)

    budget = _vmem_budget_bytes()
    if batch_tile is None:
        batch_tile = _pick_batch_tile(B, in_dim, hid_pad, out_pad, mm_bytes,
                                      sub, budget)
    else:
        batch_tile = max(sub, _round_up(batch_tile, sub))

    num_tiles = pl.cdiv(B, batch_tile)   # partial last tile handled by Pallas

    cost = pl.CostEstimate(
        flops=2 * B * (in_dim * hid_pad + hid_pad * hid_pad + hid_pad * out_pad),
        transcendentals=0,
        bytes_accessed=(
            B * in_dim * 4
            + (in_dim * hid_pad + hid_pad * hid_pad + hid_pad * out_pad) * mm_bytes
            + (2 * hid_pad + out_pad) * 4
            + B * out_pad * jnp.dtype(out_dtype).itemsize
        ),
    )

    out = pl.pallas_call(
        mlp_kernel,
        out_shape=jax.ShapeDtypeStruct((B, out_pad), out_dtype),
        grid_spec=pltpu.PrefetchScalarGridSpec(
            num_scalar_prefetch=0,
            grid=(num_tiles,),
            in_specs=[
                pl.BlockSpec((batch_tile, in_dim), lambda i: (i, 0)),  # x tile
                _resident_spec((in_dim, hid_pad)),                     # W1
                _resident_spec((1, hid_pad)),                          # b1
                _resident_spec((hid_pad, hid_pad)),                    # W2
                _resident_spec((1, hid_pad)),                          # b2
                _resident_spec((hid_pad, out_pad)),                    # W3
                _resident_spec((1, out_pad)),                          # b3
            ],
            out_specs=pl.BlockSpec((batch_tile, out_pad), lambda i: (i, 0)),
        ),
        compiler_params=pltpu.CompilerParams(
            dimension_semantics=("parallel",),
            vmem_limit_bytes=budget,
        ),
        cost_estimate=cost,
    )(x, w1p, b1p, w2p, b2p, w3p, b3p)

    # Drop the lane padding of the output (cheap: output stream is tiny).
    return out[:, :out_dim]


def init_linear(key, fan_in, fan_out, dtype=jnp.float32):
    """Deterministic PyTorch-style default init: U(-1/sqrt(fan_in), +1/sqrt(fan_in))."""
    kw, kb = jax.random.split(key)
    bound = 1.0 / jnp.sqrt(float(fan_in))
    w = jax.random.uniform(kw, (fan_in, fan_out), dtype, minval=-bound, maxval=bound)
    b = jax.random.uniform(kb, (1, fan_out), dtype, minval=-bound, maxval=bound)
    return w, b


if __name__ == "__main__":
    # Small shapes consistent with the module: MLP(input_dim=16, output_dim=4, hidden_dim=32)
    batch, input_dim, hidden_dim, output_dim = 8, 16, 32, 4

    key = jax.random.PRNGKey(0)
    kx, k1, k2, k3 = jax.random.split(key, 4)

    x = jax.random.normal(kx, (batch, input_dim), jnp.float32)
    w1, b1 = init_linear(k1, input_dim, hidden_dim)
    w2, b2 = init_linear(k2, hidden_dim, hidden_dim)
    w3, b3 = init_linear(k3, hidden_dim, output_dim)

    def reference(dt):
        h = jnp.dot(x.astype(dt), w1.astype(dt), preferred_element_type=jnp.float32) + b1
        h = jnp.maximum(h, 0.0)
        h = jnp.dot(h.astype(dt), w2.astype(dt), preferred_element_type=jnp.float32) + b2
        h = jnp.maximum(h, 0.0)
        return jnp.dot(h.astype(dt), w3.astype(dt), preferred_element_type=jnp.float32) + b3

    # Default bf16-operand path (f32 accumulation).
    out_bf16 = jax.block_until_ready(mlp_forward(x, w1, b1, w2, b2, w3, b3))
    assert out_bf16.shape == (batch, output_dim)
    assert jnp.allclose(out_bf16, reference(jnp.bfloat16), atol=5e-3, rtol=5e-3), \
        "mismatch vs bf16 reference"

    # Full-f32 path (PyTorch-fidelity numerics).
    out_f32 = jax.block_until_ready(
        mlp_forward(x, w1, b1, w2, b2, w3, b3, matmul_dtype=jnp.float32))
    assert out_f32.shape == (batch, output_dim)
    assert jnp.allclose(out_f32, reference(jnp.float32), atol=1e-4, rtol=1e-4), \
        "mismatch vs f32 reference"

    print("KERNEL_OK")
</pallas_src>

<mosaic_0001>
module attributes {stable_mosaic.version = 11 : i64} {
  func.func @mlp_kernel(%arg0: i32, %arg1: memref<8x16xf32, #tpu.memory_space<vmem>>, %arg2: memref<16x128xbf16, #tpu.memory_space<vmem>>, %arg3: memref<1x128xf32, #tpu.memory_space<vmem>>, %arg4: memref<128x128xbf16, #tpu.memory_space<vmem>>, %arg5: memref<1x128xf32, #tpu.memory_space<vmem>>, %arg6: memref<128x128xbf16, #tpu.memory_space<vmem>>, %arg7: memref<1x128xf32, #tpu.memory_space<vmem>>, %arg8: memref<8x128xf32, #tpu.memory_space<vmem>>) attributes {dimension_semantics = [#tpu.dimension_semantics<parallel>], iteration_bounds = array<i64: 1>, scalar_prefetch = 0 : i64, scratch_operands = 0 : i64, tpu.core_type = #tpu.core_type<tc>, window_params = [{transform_indices = @transform_0, window_bounds = array<i64: 8, 16>}, {pipeline_mode = #tpu.pipeline_mode<synchronous>, transform_indices = @transform_1, window_bounds = array<i64: 16, 128>}, {pipeline_mode = #tpu.pipeline_mode<synchronous>, transform_indices = @transform_2, window_bounds = array<i64: 1, 128>}, {pipeline_mode = #tpu.pipeline_mode<synchronous>, transform_indices = @transform_3, window_bounds = array<i64: 128, 128>}, {pipeline_mode = #tpu.pipeline_mode<synchronous>, transform_indices = @transform_4, window_bounds = array<i64: 1, 128>}, {pipeline_mode = #tpu.pipeline_mode<synchronous>, transform_indices = @transform_5, window_bounds = array<i64: 128, 128>}, {pipeline_mode = #tpu.pipeline_mode<synchronous>, transform_indices = @transform_6, window_bounds = array<i64: 1, 128>}, {transform_indices = @transform_7, window_bounds = array<i64: 8, 128>}]} {
    %c0 = arith.constant 0 : index
    %c0_0 = arith.constant 0 : index
    %0 = vector.load %arg1[%c0, %c0_0] : memref<8x16xf32, #tpu.memory_space<vmem>>, vector<8x16xf32>
    %1 = arith.truncf %0 : vector<8x16xf32> to vector<8x16xbf16>
    %c0_1 = arith.constant 0 : index
    %c0_2 = arith.constant 0 : index
    %2 = vector.load %arg2[%c0_1, %c0_2] : memref<16x128xbf16, #tpu.memory_space<vmem>>, vector<16x128xbf16>
    %cst = arith.constant dense<0.000000e+00> : vector<8x128xf32>
    %3 = tpu.matmul %1, %2, %cst {dimension_numbers = #tpu.dot_dimension_numbers<[1], [0], [0], [1], [0, 0, 1, 1], [], []>} : vector<8x16xbf16>, vector<16x128xbf16>, vector<8x128xf32> -> vector<8x128xf32>
    %c0_3 = arith.constant 0 : index
    %c0_4 = arith.constant 0 : index
    %4 = vector.load %arg3[%c0_3, %c0_4] : memref<1x128xf32, #tpu.memory_space<vmem>>, vector<1x128xf32>
    %5 = vector.broadcast %4 : vector<1x128xf32> to vector<8x128xf32>
    %6 = arith.addf %3, %5 : vector<8x128xf32>
    %cst_5 = arith.constant 0.000000e+00 : f32
    %7 = vector.broadcast %cst_5 : f32 to vector<8x128xf32>
    %8 = arith.maximumf %6, %7 : vector<8x128xf32>
    %9 = arith.truncf %8 : vector<8x128xf32> to vector<8x128xbf16>
    %c0_6 = arith.constant 0 : index
    %c0_7 = arith.constant 0 : index
    %10 = vector.load %arg4[%c0_6, %c0_7] : memref<128x128xbf16, #tpu.memory_space<vmem>>, vector<128x128xbf16>
    %cst_8 = arith.constant dense<0.000000e+00> : vector<8x128xf32>
    %11 = tpu.matmul %9, %10, %cst_8 {dimension_numbers = #tpu.dot_dimension_numbers<[1], [0], [0], [1], [0, 0, 1, 1], [], []>} : vector<8x128xbf16>, vector<128x128xbf16>, vector<8x128xf32> -> vector<8x128xf32>
    %c0_9 = arith.constant 0 : index
    %c0_10 = arith.constant 0 : index
    %12 = vector.load %arg5[%c0_9, %c0_10] : memref<1x128xf32, #tpu.memory_space<vmem>>, vector<1x128xf32>
    %13 = vector.broadcast %12 : vector<1x128xf32> to vector<8x128xf32>
    %14 = arith.addf %11, %13 : vector<8x128xf32>
    %cst_11 = arith.constant 0.000000e+00 : f32
    %15 = vector.broadcast %cst_11 : f32 to vector<8x128xf32>
    %16 = arith.maximumf %14, %15 : vector<8x128xf32>
    %17 = arith.truncf %16 : vector<8x128xf32> to vector<8x128xbf16>
    %c0_12 = arith.constant 0 : index
    %c0_13 = arith.constant 0 : index
    %18 = vector.load %arg6[%c0_12, %c0_13] : memref<128x128xbf16, #tpu.memory_space<vmem>>, vector<128x128xbf16>
    %cst_14 = arith.constant dense<0.000000e+00> : vector<8x128xf32>
    %19 = tpu.matmul %17, %18, %cst_14 {dimension_numbers = #tpu.dot_dimension_numbers<[1], [0], [0], [1], [0, 0, 1, 1], [], []>} : vector<8x128xbf16>, vector<128x128xbf16>, vector<8x128xf32> -> vector<8x128xf32>
    %c0_15 = arith.constant 0 : index
    %c0_16 = arith.constant 0 : index
    %20 = vector.load %arg7[%c0_15, %c0_16] : memref<1x128xf32, #tpu.memory_space<vmem>>, vector<1x128xf32>
    %21 = vector.broadcast %20 : vector<1x128xf32> to vector<8x128xf32>
    %22 = arith.addf %19, %21 : vector<8x128xf32>
    %c0_17 = arith.constant 0 : index
    %c0_18 = arith.constant 0 : index
    %23 = vector.load %arg8[%c0_17, %c0_18] : memref<8x128xf32, #tpu.memory_space<vmem>>, vector<8x128xf32>
    tpu.vector_store %arg8[%c0_17, %c0_18], %22 {strides = array<i32>} : memref<8x128xf32, #tpu.memory_space<vmem>>, vector<8x128xf32>,
    return
  }
  func.func @transform_0(%arg0: i32) -> (i32, i32) {
    %c0_i32 = arith.constant 0 : i32
    %c0_i32_0 = arith.constant 0 : i32
    return %arg0, %c0_i32 : i32, i32
  }
  func.func @transform_1(%arg0: i32) -> (i32, i32) {
    %c0_i32 = arith.constant 0 : i32
    %c0_i32_0 = arith.constant 0 : i32
    %c0_i32_1 = arith.constant 0 : i32
    return %c0_i32, %c0_i32_0 : i32, i32
  }
  func.func @transform_2(%arg0: i32) -> (i32, i32) {
    %c0_i32 = arith.constant 0 : i32
    %c0_i32_0 = arith.constant 0 : i32
    %c0_i32_1 = arith.constant 0 : i32
    return %c0_i32, %c0_i32_0 : i32, i32
  }
  func.func @transform_3(%arg0: i32) -> (i32, i32) {
    %c0_i32 = arith.constant 0 : i32
    %c0_i32_0 = arith.constant 0 : i32
    %c0_i32_1 = arith.constant 0 : i32
    return %c0_i32, %c0_i32_0 : i32, i32
  }
  func.func @transform_4(%arg0: i32) -> (i32, i32) {
    %c0_i32 = arith.constant 0 : i32
    %c0_i32_0 = arith.constant 0 : i32
    %c0_i32_1 = arith.constant 0 : i32
    return %c0_i32, %c0_i32_0 : i32, i32
  }
  func.func @transform_5(%arg0: i32) -> (i32, i32) {
    %c0_i32 = arith.constant 0 : i32
    %c0_i32_0 = arith.constant 0 : i32
    %c0_i32_1 = arith.constant 0 : i32
    return %c0_i32, %c0_i32_0 : i32, i32
  }
  func.func @transform_6(%arg0: i32) -> (i32, i32) {
    %c0_i32 = arith.constant 0 : i32
    %c0_i32_0 = arith.constant 0 : i32
    %c0_i32_1 = arith.constant 0 : i32
    return %c0_i32, %c0_i32_0 : i32, i32
  }
  func.func @transform_7(%arg0: i32) -> (i32, i32) {
    %c0_i32 = arith.constant 0 : i32
    %c0_i32_0 = arith.constant 0 : i32
    return %arg0, %c0_i32 : i32, i32
  }
}

</mosaic_0001>

<bundles_post_ra>
// kernel: mlp_forward.1
= control target key start
LH: loop header
LB: loop body
LE: loop exit
PB: predicated region body
PF: predicated region fallthrough
CT: control target
= control target key end

     0   :  { %vm41_vm0 = vcmask 130048   ;;  %s424_s1 = inlined_call_operand.vmem [shape: bf16[16,128], index: 1, kind: input, shape index: {}]   ;;  %s425_s0 = inlined_call_operand.vmem [shape: f32[8,16], index: 0, kind: input, shape index: {}]   ;;  %s426_s3 = inlined_call_operand.vmem [shape: bf16[128,128], index: 3, kind: input, shape index: {}]   ;;  %s427_s2 = inlined_call_operand.vmem [shape: f32[1,128], index: 2, kind: input, shape index: {}]   ;;  %s428_s4 = inlined_call_operand.vmem [shape: f32[1,128], index: 4, kind: input, shape index: {}]   ;;  %s429_s5 = inlined_call_operand.vmem [shape: bf16[128,128], index: 5, kind: input, shape index: {}]   ;;  %s430_s6 = inlined_call_operand.vmem [shape: f32[1,128], index: 6, kind: input, shape index: {}]   ;;  %s431_s7 = inlined_call_operand.vmem [shape: f32[8,128], index: 7, kind: output, shape index: {}]  }
   0x1   :  { %v298_v0 = vld [vmem:[%s424_s1] sm:$0xff]  ;;  %v306_v2 = vld [vmem:[%s426_s3 + $0x38] sm:$0xff]  ;;  %v305_v4 = vld [vmem:[%s426_s3 + $0x30] sm:$0xff] }
   0x2   :  { %v27_v1 = vld [vmem:[%s425_s0] sm:$0xff]  ;;  %52 = vmatpush.bf16.msra.mxu0 %v298_v0  ;;  %128 = vmatpush.bf16.msra.mxu1 %v306_v2  ;;  %v304_v5 = vld [vmem:[%s426_s3 + $0x28] sm:$0xff]  ;;  %v302_v7 = vld [vmem:[%s426_s3 + $0x18] sm:$0xff] }
   0x3   :  { %v28_v3 = vpack.c.bf16 %v27_v1, %v27_v1  ;;  %v303_v6 = vld [vmem:[%s426_s3 + $0x20] sm:$0xff]  ;;  %v301_v8 = vld [vmem:[%s426_s3 + $0x10] sm:$0xff]  ;;  %v300_v9 = vld [vmem:[%s426_s3 + $0x8] sm:$0xff] }
   0x4   :  { %v299_v10 = vld [vmem:[%s426_s3] sm:$0xff]  ;;  %v314_v11 = vld [vmem:[%s429_s5 + $0x38] sm:$0xff]  ;;  %v313_v12 = vld [vmem:[%s429_s5 + $0x30] sm:$0xff] }
   0x5   :  { %233 = vmatmul.msk.bf16.vlgmr.msra.gmra.mxu0 %vm41_vm0, %v28_v3  ;;  %211 = vmatpush.bf16.msra.mxu2 %v314_v11  ;;  %v312_v13 = vld [vmem:[%s429_s5 + $0x28] sm:$0xff]  ;;  %v311_v14 = vld [vmem:[%s429_s5 + $0x20] sm:$0xff]  ;;  %v310_v15 = vld [vmem:[%s429_s5 + $0x18] sm:$0xff] }
   0x6   :  { %129 = vmatpush.bf16.msra.mxu1 %v305_v4  ;;  %v309_v16 = vld [vmem:[%s429_s5 + $0x10] sm:$0xff]  ;;  %v315_v17 = vld [vmem:[%s427_s2] ss:$0 sm:$0xff]  ;;  %v308_v23 = vld [vmem:[%s429_s5 + $0x8] sm:$0xff] }
   0x7   :  { %v307_v24 = vld [vmem:[%s429_s5] sm:$0xff] }
   0x8   :  { %v316_v25 = vld [vmem:[%s428_s4] ss:$0 sm:$0xff] }
   0x9   :  { %212 = vmatpush.bf16.msra.mxu2 %v313_v12  ;;  %v317_v31 = vld [vmem:[%s430_s6] ss:$0 sm:$0xff] }
   0xa   :  { %130 = vmatpush.bf16.msra.mxu1 %v304_v5 }
   0xd   :  { %213 = vmatpush.bf16.msra.mxu2 %v312_v13 }
   0xe   :  { %131 = vmatpush.bf16.msra.mxu1 %v303_v6 }
  0x11   :  { %214 = vmatpush.bf16.msra.mxu2 %v311_v14 }
  0x12   :  { %132 = vmatpush.bf16.msra.mxu1 %v302_v7 }
  0x15   :  { %215 = vmatpush.bf16.msra.mxu2 %v310_v15 }
  0x16   :  { %133 = vmatpush.bf16.msra.mxu1 %v301_v8 }
  0x19   :  { %216 = vmatpush.bf16.msra.mxu2 %v309_v16 }
  0x1a   :  { %134 = vmatpush.bf16.msra.mxu1 %v300_v9 }
  0x1d   :  { %217 = vmatpush.bf16.msra.mxu2 %v308_v23 }
  0x1e   :  { %135 = vmatpush.bf16.msra.mxu1 %v299_v10 }
  0x21   :  { %218 = vmatpush.bf16.msra.mxu2 %v307_v24 }
  0x82   :  { %v54_v18 = vpop.f32.mrf.mxu0 }
  0x83   :  { %v55_v19 = vadd.f32 %v315_v17, %v54_v18 }
  0x85   :  { %v58_v20 = vmax.f32 %v55_v19, 0.0 }
  0x87   :  { %v59_v21 = vpack.c.bf16 %v58_v20, %v58_v20 }
  0x89   :  { %136 = vmatmul.bf16.vlgmr.msra.gmra.mxu1 %v59_v21 }
  0x8a   :  { %v56_v22 = vpop.f32.mrf.mxu0 }
 0x106   :  { %v137_v26 = vpop.f32.mrf.mxu1 }
 0x107   :  { %v138_v27 = vadd.f32 %v316_v25, %v137_v26 }
 0x109   :  { %v141_v28 = vmax.f32 %v138_v27, 0.0 }
 0x10b   :  { %v142_v29 = vpack.c.bf16 %v141_v28, %v141_v28 }
 0x10d   :  { %219 = vmatmul.bf16.vlgmr.msra.gmra.mxu2 %v142_v29 }
 0x10e   :  { %v139_v30 = vpop.f32.mrf.mxu1 }
 0x190   :  { %v220_v32 = vpop.f32.mrf.mxu2 }
 0x191   :  { %v221_v33 = vadd.f32 %v317_v31, %v220_v32 }
 0x193   :  { %224 = vst [vmem:[%s431_s7] sm:$0xff] %v221_v33 }
 0x198   :  { %v222_v34 = vpop.f32.mrf.mxu2 }

</bundles_post_ra>
